<compile_context>
chip_gen: v6e
topology: v6e:2x2x1
jax: 0.10.0
libtpu: 0.0.40
codegen_flags: <defaults>
</compile_context>

<pallas_src>
import functools

import jax
import jax.numpy as jnp
from jax.experimental import pallas as pl
from jax.experimental.pallas import tpu as pltpu


# ----------------------------- kernel body ---------------------------------


def _layer_norm_kernel(x_ref, w_ref, b_ref, o_ref, *, eps: float, features: int,
                       apply_in_input_dtype: bool):
    x = x_ref[...]                                   # [tile_rows, F], input dtype
    xf = x.astype(jnp.float32)

    n = jnp.float32(features)
    # Pass 1: mean (f32 accumulation).
    mean = jnp.sum(xf, axis=-1, keepdims=True) / n                  # [tile_rows, 1]
    # Pass 2: unbiased variance from centered squares (numerically stable).
    centered = xf - mean                                            # [tile_rows, F] f32
    var = jnp.sum(centered * centered, axis=-1, keepdims=True) / jnp.float32(features - 1)
    var = jnp.maximum(var, jnp.float32(0.0))
    std = jnp.sqrt(var)
    inv = jnp.float32(1.0) / (std + jnp.float32(eps))               # [tile_rows, 1]

    if apply_in_input_dtype:
        # bf16 apply phase (v6e/v7x): per-row scalars computed in f32, full-tile
        # work in the packed native dtype. Output dtype == input dtype anyway.
        dt = x_ref.dtype
        out = (centered.astype(dt) * inv.astype(dt)) * w_ref[...].astype(dt) \
              + b_ref[...].astype(dt)
        o_ref[...] = out.astype(o_ref.dtype)
    else:
        w = w_ref[...].astype(jnp.float32)
        b = b_ref[...].astype(jnp.float32)
        out = centered * inv * w + b
        o_ref[...] = out.astype(o_ref.dtype)


# --------------------------- tiling heuristics ------------------------------


def _device_kind() -> str:
    try:
        return jax.devices()[0].device_kind.lower()
    except Exception:
        return ""


def _num_tensorcores(kind: str) -> int:
    # v7x has 2 TensorCores per chip; v5e/v6e have 1.
    return 2 if "v7" in kind else 1


def _has_bf16_vpu(kind: str) -> bool:
    # v6e/v7x have bf16 VALUs; v2-v5 do not.
    for old in ("v2", "v3", "v4", "v5"):
        if old in kind:
            return False
    return True


def _vmem_capacity_bytes(kind: str) -> int:
    try:
        cap = int(pltpu.get_tpu_info().vmem_capacity_bytes)
    except Exception:
        cap = 64 * 1024 * 1024  # conservative fallback (v7x-safe)
    if "v7" in kind:
        # Per-TC VMEM on v7x is 64 MiB; clamp in case the query reports
        # per-chip (128 MiB) capacity.
        cap = min(cap, 64 * 1024 * 1024)
    return cap


def _pick_tiling(rows: int, features: int, itemsize: int, kind: str):
    """Pick tile_rows from VMEM budget + block-bytes target + min-steps rule."""
    vmem_cap = _vmem_capacity_bytes(kind)
    budget = vmem_cap // 2  # headroom for pipelining / compiler scratch

    # Per-row VMEM cost, pessimistic:
    #  * double-buffered input + output pipeline tiles: 2*2*F*itemsize
    #  * ~5 live full-tile f32 temporaries inside the kernel
    #    (x upcast, centered, squares, apply product chain, pre-cast output).
    bytes_per_row = 4 * features * itemsize + 20 * features

    # Sublane packing: 8 rows for 4-byte dtypes, 16 for bf16, 32 for int8/fp8.
    sublane = max(8, 32 // itemsize)

    # (a) VMEM-budget cap.
    t_budget = max(1, budget // bytes_per_row)
    # (b) bytes-per-block target: ~16 MiB input block so per-step overhead
    #     (~0.35us) stays negligible even on v7x's fast HBM, without the old
    #     hard 1024-row cap starving small feature dims.
    t_target = max(1, (16 << 20) // max(1, features * itemsize))
    # (c) min-steps cap: at least 4 grid steps per TensorCore so DMA/compute
    #     overlap exists and the parallel axis shards across both v7x cores.
    min_steps = 4 * _num_tensorcores(kind)
    t_steps = max(1, rows // min_steps)

    tile_rows = min(t_budget, t_target, t_steps)
    tile_rows = max(sublane, (tile_rows // sublane) * sublane)
    if tile_rows >= rows:
        # Block equal to the full dim is always legal (even if not a multiple
        # of the sublane packing).
        tile_rows = rows

    needed = tile_rows * bytes_per_row + 2 * 2 * features * 4  # + w/b buffers
    vmem_limit = min(int(vmem_cap * 0.75), max(needed + (8 << 20), 32 << 20))
    return tile_rows, vmem_limit


# ------------------------------- wrapper ------------------------------------


def layer_norm(x, weight, bias, eps=1e-6, tile_rows=None):
    """LayerNorm over the last axis of x (any leading dims)."""
    orig_shape = x.shape
    features = orig_shape[-1]
    rows = 1
    for d in orig_shape[:-1]:
        rows *= d

    x2 = x.reshape(rows, features)
    w2 = weight.reshape(1, features)
    b2 = bias.reshape(1, features)

    kind = _device_kind()
    itemsize = jnp.dtype(x.dtype).itemsize
    auto_rows, vmem_limit = _pick_tiling(rows, features, itemsize, kind)
    if tile_rows is None:
        tile_rows = auto_rows
    tile_rows = min(tile_rows, rows)

    # bf16 apply phase only where the VPU has native bf16 (v6e / v7x).
    apply_in_input_dtype = (x.dtype == jnp.bfloat16) and _has_bf16_vpu(kind)

    # No HBM padding: cdiv grid; the partial last block's OOB writes are masked
    # and each row's reduction is independent, so tail garbage is harmless.
    grid = (pl.cdiv(rows, tile_rows),)

    out = pl.pallas_call(
        functools.partial(
            _layer_norm_kernel,
            eps=float(eps),
            features=int(features),
            apply_in_input_dtype=bool(apply_in_input_dtype),
        ),
        out_shape=jax.ShapeDtypeStruct((rows, features), x.dtype),
        grid_spec=pltpu.PrefetchScalarGridSpec(
            num_scalar_prefetch=0,
            grid=grid,
            in_specs=[
                pl.BlockSpec((tile_rows, features), lambda i: (i, 0)),
                pl.BlockSpec((1, features), lambda i: (0, 0)),  # weight: resident
                pl.BlockSpec((1, features), lambda i: (0, 0)),  # bias: resident
            ],
            out_specs=pl.BlockSpec((tile_rows, features), lambda i: (i, 0)),
        ),
        compiler_params=pltpu.CompilerParams(
            dimension_semantics=("parallel",),
            vmem_limit_bytes=vmem_limit,
        ),
    )(x2, w2, b2)

    return out.reshape(orig_shape)


# ------------------------------- self-test -----------------------------------


if __name__ == "__main__":
    key = jax.random.PRNGKey(0)

    batch, seq, hidden = 2, 8, 32
    x = jax.random.normal(key, (batch, seq, hidden), dtype=jnp.float32)

    # Deterministic parameter init matching nn.Parameter(torch.ones/zeros(features)).
    weight = jnp.ones((hidden,), dtype=jnp.float32)
    bias = jnp.zeros((hidden,), dtype=jnp.float32)

    out = layer_norm(x, weight, bias, eps=1e-6)
    jax.block_until_ready(out)

    # Reference check (pure JAX, same math as the PyTorch module).
    mean = jnp.mean(x, axis=-1, keepdims=True)
    var = jnp.sum((x - mean) ** 2, axis=-1, keepdims=True) / (hidden - 1)
    std = jnp.sqrt(var)
    ref = weight * (x - mean) / (std + 1e-6) + bias
    assert jnp.allclose(out, ref, atol=1e-4, rtol=1e-4), "mismatch vs reference"

    print("KERNEL_OK")
</pallas_src>

<mosaic_0001>
module attributes {stable_mosaic.version = 11 : i64} {
  func.func @_layer_norm_kernel(%arg0: i32, %arg1: memref<8x32xf32, #tpu.memory_space<vmem>>, %arg2: memref<1x32xf32, #tpu.memory_space<vmem>>, %arg3: memref<1x32xf32, #tpu.memory_space<vmem>>, %arg4: memref<8x32xf32, #tpu.memory_space<vmem>>) attributes {dimension_semantics = [#tpu.dimension_semantics<parallel>], iteration_bounds = array<i64: 2>, scalar_prefetch = 0 : i64, scratch_operands = 0 : i64, tpu.core_type = #tpu.core_type<tc>, window_params = [{transform_indices = @transform_0, window_bounds = array<i64: 8, 32>}, {pipeline_mode = #tpu.pipeline_mode<synchronous>, transform_indices = @transform_1, window_bounds = array<i64: 1, 32>}, {pipeline_mode = #tpu.pipeline_mode<synchronous>, transform_indices = @transform_2, window_bounds = array<i64: 1, 32>}, {transform_indices = @transform_3, window_bounds = array<i64: 8, 32>}]} {
    %c0 = arith.constant 0 : index
    %c0_0 = arith.constant 0 : index
    %0 = vector.load %arg1[%c0, %c0_0] : memref<8x32xf32, #tpu.memory_space<vmem>>, vector<8x32xf32>
    %cst = arith.constant dense<0.000000e+00> : vector<8xf32>
    %1 = vector.multi_reduction <add>, %0, %cst [1] : vector<8x32xf32> to vector<8xf32>
    %2 = vector.shape_cast %1 : vector<8xf32> to vector<8x1xf32>
    %cst_1 = arith.constant 3.200000e+01 : f32
    %3 = vector.broadcast %cst_1 : f32 to vector<8x1xf32>
    %4 = arith.divf %2, %3 : vector<8x1xf32>
    %5 = vector.broadcast %4 : vector<8x1xf32> to vector<8x32xf32>
    %6 = arith.subf %0, %5 : vector<8x32xf32>
    %7 = arith.mulf %6, %6 : vector<8x32xf32>
    %cst_2 = arith.constant dense<0.000000e+00> : vector<8xf32>
    %8 = vector.multi_reduction <add>, %7, %cst_2 [1] : vector<8x32xf32> to vector<8xf32>
    %9 = vector.shape_cast %8 : vector<8xf32> to vector<8x1xf32>
    %cst_3 = arith.constant 3.100000e+01 : f32
    %10 = vector.broadcast %cst_3 : f32 to vector<8x1xf32>
    %11 = arith.divf %9, %10 : vector<8x1xf32>
    %cst_4 = arith.constant 0.000000e+00 : f32
    %12 = vector.broadcast %cst_4 : f32 to vector<8x1xf32>
    %13 = arith.maximumf %11, %12 : vector<8x1xf32>
    %14 = math.sqrt %13 : vector<8x1xf32>
    %cst_5 = arith.constant 9.99999997E-7 : f32
    %15 = vector.broadcast %cst_5 : f32 to vector<8x1xf32>
    %16 = arith.addf %14, %15 : vector<8x1xf32>
    %cst_6 = arith.constant 1.000000e+00 : f32
    %17 = vector.broadcast %cst_6 : f32 to vector<8x1xf32>
    %18 = arith.divf %17, %16 : vector<8x1xf32>
    %c0_7 = arith.constant 0 : index
    %c0_8 = arith.constant 0 : index
    %19 = vector.load %arg2[%c0_7, %c0_8] : memref<1x32xf32, #tpu.memory_space<vmem>>, vector<1x32xf32>
    %c0_9 = arith.constant 0 : index
    %c0_10 = arith.constant 0 : index
    %20 = vector.load %arg3[%c0_9, %c0_10] : memref<1x32xf32, #tpu.memory_space<vmem>>, vector<1x32xf32>
    %21 = vector.broadcast %18 : vector<8x1xf32> to vector<8x32xf32>
    %22 = arith.mulf %6, %21 : vector<8x32xf32>
    %23 = vector.broadcast %19 : vector<1x32xf32> to vector<8x32xf32>
    %24 = arith.mulf %22, %23 : vector<8x32xf32>
    %25 = vector.broadcast %20 : vector<1x32xf32> to vector<8x32xf32>
    %26 = arith.addf %24, %25 : vector<8x32xf32>
    %c0_11 = arith.constant 0 : index
    %c0_12 = arith.constant 0 : index
    %27 = vector.load %arg4[%c0_11, %c0_12] : memref<8x32xf32, #tpu.memory_space<vmem>>, vector<8x32xf32>
    tpu.vector_store %arg4[%c0_11, %c0_12], %26 {strides = array<i32>} : memref<8x32xf32, #tpu.memory_space<vmem>>, vector<8x32xf32>,
    return
  }
  func.func @transform_0(%arg0: i32) -> (i32, i32) {
    %c0_i32 = arith.constant 0 : i32
    %c0_i32_0 = arith.constant 0 : i32
    return %arg0, %c0_i32 : i32, i32
  }
  func.func @transform_1(%arg0: i32) -> (i32, i32) {
    %c0_i32 = arith.constant 0 : i32
    %c0_i32_0 = arith.constant 0 : i32
    %c0_i32_1 = arith.constant 0 : i32
    return %c0_i32, %c0_i32_0 : i32, i32
  }
  func.func @transform_2(%arg0: i32) -> (i32, i32) {
    %c0_i32 = arith.constant 0 : i32
    %c0_i32_0 = arith.constant 0 : i32
    %c0_i32_1 = arith.constant 0 : i32
    return %c0_i32, %c0_i32_0 : i32, i32
  }
  func.func @transform_3(%arg0: i32) -> (i32, i32) {
    %c0_i32 = arith.constant 0 : i32
    %c0_i32_0 = arith.constant 0 : i32
    return %arg0, %c0_i32 : i32, i32
  }
}

</mosaic_0001>

<bundles_post_ra>
// kernel: tpu_custom_call.1
= control target key start
LH: loop header
LB: loop body
LE: loop exit
PB: predicated region body
PF: predicated region fallthrough
CT: control target
= control target key end

     0   :  { %8 = vsyncpa [#allocation3], 0  ;;  %s647_s0 = inlined_call_operand.hbm [shape: f32[16,32], index: 0, kind: input, shape index: {}]   ;;  %s648_s1 = inlined_call_operand.vmem [shape: f32[1,32], index: 1, kind: input, shape index: {}]   ;;  %s649_s2 = inlined_call_operand.vmem [shape: f32[1,32], index: 2, kind: input, shape index: {}]   ;;  %s650_s3 = inlined_call_operand.hbm [shape: f32[16,32], index: 3, kind: output, shape index: {}]  }
   0x1   :  { %10 = vsyncpa [#allocation3 + $0x1], 0 }
   0x2   :  { %11 = vsyncpa [#allocation4], 0 }
   0x3   :  { %13 = vsyncpa [#allocation4 + $0x1], 0  ;;  %s493_s12 = smov 0   ;;  %s495_s13 = smov 0  }
   0x4   :  { %s497_s14 = smov 0   ;;  %s499_s15 = smov 0  }
   0x5 LB: > { %s514_s16 = sadd.s32 4294967295, %s469_s15   ;;  %s313_s17 = sadd.s32 4294967294, %s469_s15   ;;  %s469_s15 = sphi %s499_s15, %s667_s15   ;;  %s465_s14 = sphi %s497_s14, %s666_s14   ;;  %s461_s13 = sphi %s495_s13, %s665_s13   ;;  %s457_s12 = sphi %s493_s12, %s664_s12  }
   0x6   : > { %s518_s18 = sadd.s32 1, %s469_s15   ;;  %s26_s19 = sadd.s32 1, %s465_s14 }
   0x7   : > { %s23_s20 = ssub.s32 %s469_s15, %s518_s18  ;;  %p33_p0 = scmp.ne.s32.totalorder %s465_s14, %s461_s13 }
   0x8   : > { %p24_p1 = scmp.eq.s32.totalorder %s23_s20, 0  ;;  %p34_p2 = scmp.eq.s32.totalorder %s469_s15, 0 }
   0x9   : > { %p39_p3 = scmp.ne.s32.totalorder %s461_s13, %s457_s12  ;;  %p40_p4 = scmp.eq.s32.totalorder %s514_s16, 0 }
   0xa   : > { %s530_s21 = scalar_select %p24_p1, %s465_s14, %s26_s19  }
   0xb   : > { %p532_p5 = por %p34_p2, %p33_p0  ;;  %p536_p6 = por %p40_p4, %p39_p3 }
   0xc   : > { %p105_p7 = scmp.eq.s32.totalorder %s514_s16, 1  ;;  %p111_p8 = scmp.eq.s32.totalorder %s313_s17, 1 }
   0xd   : > { %s654_s23 = scalar_select %p536_p6, 1, 0 }
   0xe   : > { %p339_p10 = scmp.lt.s32.totalorder %s469_s15, 2  ;;  %p543_p11 = por %p105_p7, %p33_p0 }
   0xf   : > { %p547_p12 = por %p111_p8, %p39_p3  ;;  %s137_s26 = sand.u32 1, %s465_s14  }
  0x10   : > { %s655_s24 = scalar_select %p543_p11, 1, 0 }
  0x11   : > { %s656_s25 = scalar_select %p547_p12, 1, 0 }
  0x12   : > { %s317_s27 = sshll.u32 %s469_s15, 7  ;;  %s316_s28 = sshll.u32 %s137_s26, 3 }
  0x13   : > { %s556_s4 = scalar_lea.hbm %s647_s0, %s317_s27  ;;  %s141_s5 = scalar_lea.vmem [#allocation2], %s316_s28 }
  0x14   : > { %s148_s6 = sshll.u32 %s141_s5, 4  ;;  %p560_p13 = pnand %p339_p10, %p532_p5  ;;  %s564_s6 = int_to_ptr.vmem [resolvable:$true] %s148_s6 }
  0x15   : > { %s138_s8 = scalar_lea.sflag [#allocation3], %s137_s26  ;;  %s377_s9 = scalar_lea.hbm %s556_s4, 128 }
  0x16   : > { %p378_p2 = scmp.ne.s32.totalorder %s556_s4, %s377_s9  ;;  %p379_p3 = pneg %p560_p13 }
  0x17   : > { %s382_s17 = scalar_lea.hbm %s647_s0, 256  ;;  %p383_p5 = scmp.lt.s32.totalorder %s556_s4, %s647_s0 }
  0x18   : > { %p380_p4 = pnand %p379_p3, %p378_p2  ;;  %p384_p8 = scmp.lt.s32.totalorder %s382_s17, %s377_s9 }
  0x1a   : > { %p381_p7 = pneg %p380_p4  ;;  %p385_p10 = por %p384_p8, %p383_p5 }
  0x1c   : > { %p386_p9 = pnand %p385_p10, %p381_p7 }
  0x1e   : > { %389 = shalt.err (!%p386_p9)
}
  0x1f   : > { %s390_s22 = scalar_lea.vmem %s564_s6, 128  ;;  %s471_s26 = smov [#allocation2]  }
  0x20   : > { %p391_p0 = scmp.ne.s32.totalorder %s564_s6, %s390_s22  ;;  %s395_s27 = sshll.u32 %s471_s26, 4  ;;  %s396_s27 = int_to_ptr.vmem [resolvable:$false] %s395_s27 }
  0x21   : > { %s397_s28 = scalar_lea.vmem %s396_s27, 256  ;;  %p398_p4 = scmp.lt.s32.totalorder %s564_s6, %s396_s27 }
  0x22   : > { %p393_p1 = pnand %p391_p0, %p379_p3  ;;  %p399_p12 = scmp.lt.s32.totalorder %s397_s28, %s390_s22 }
  0x24   : > { %p394_p2 = pneg %p393_p1  ;;  %p400_p11 = por %p399_p12, %p398_p4 }
  0x26   : > { %p401_p6 = pnand %p400_p11, %p394_p2 }
  0x28   : > { %404 = shalt.err (!%p401_p6)
}
  0x29   : > { %334 = dma.hbm_to_vmem [thread:$0]  (!%p560_p13), %s556_s4, 128, %s564_s6, %s138_s8  }
  0x2a   : > { %p658_p9 = scmp.lt.s32.totalorder %s469_s15, 3  ;;  %p659_p7 = scmp.ge.s32.totalorder %s469_s15, 1 }
  0x2c   : > { %p154_p0 = pnand %p659_p7, %p658_p9 }
  0x2d   : > { %s591_s29 = sand.u32 (!%p154_p0), 1, %s461_s13   ;;  %p660_p6 = scmp.ne.s32.totalorder (!%p154_p0), %s654_s23, 0 }
  0x2e   : > { %157 = sbr.rel (%p154_p0) target bundleno = 394 (0x18a), region = 32  ;;  %s319_s30 = sshll.u32 (!%p154_p0), %s591_s29, 3 }
  0x2f   : > { %s160_s5 = scalar_lea.sflag (!%p154_p0), [#allocation3], %s591_s29  ;;  %s163_s7 = scalar_lea.vmem (!%p154_p0), [#allocation2], %s319_s30 }
  0x33   : > { %448 = dma.done.wait (%p660_p6), %s160_s5, 128  }
  0x34   : > { %450 = vsyncadd (%p660_p6), %s160_s5, 4294967168  ;;  %vm187_vm0 = vcmask 261120   ;;  %v186_v0 = vld [vmem:[%s163_s7] sm:$0xff]  ;;  %s324_s9 = sshll.u32 %s514_s16, 7  ;;  %s185_s10 = scalar_lea.vmem [#allocation5], %s319_s30 }
  0x35   : > { %v188_v1 = vsel %vm187_vm0, %v186_v0, 0.0  ;;  %v321_v17 = vld [vmem:[%s648_s1] ss:$0 sm:$0xff]  ;;  %s243_s11 = sshll.u32 %s185_s10, 4  ;;  %s241_s20 = scalar_lea.hbm %s650_s3, %s324_s9  ;;  %s244_s11 = int_to_ptr.vmem [resolvable:$true] %s243_s11 }
  0x36   : > { %189 = vadd.xlane.f32.xlu0 %v188_v1  ;;  %v322_v19 = vld [vmem:[%s649_s2] ss:$0 sm:$0xff]  ;;  %s230_s22 = scalar_lea.sflag [#allocation4], %s591_s29  ;;  %s405_s26 = scalar_lea.vmem %s244_s11, 128 }
  0x37   : > { %p406_p11 = scmp.ne.s32.totalorder %s244_s11, %s405_s26  ;;  %p661_p12 = scmp.ne.s32.totalorder %s655_s24, 0 }
  0x38   : > { %s472_s27 = smov [#allocation5]  }
  0x39   : > { %p407_p13 = pnand %p406_p11, %p661_p12  ;;  %s409_s16 = sshll.u32 %s472_s27, 4  ;;  %s410_s16 = int_to_ptr.vmem [resolvable:$false] %s409_s16 }
  0x3a   : > { %s411_s28 = scalar_lea.vmem %s410_s16, 256  ;;  %p412_p3 = scmp.lt.s32.totalorder %s244_s11, %s410_s16 }
  0x3b   : > { %p408_p1 = pneg %p407_p13  ;;  %p413_p5 = scmp.lt.s32.totalorder %s411_s28, %s405_s26 }
  0x3d   : > { %p414_p8 = por %p413_p5, %p412_p3 }
  0x3f   : > { %p415_p10 = pnand %p414_p8, %p408_p1 }
  0xbf   : > { %v190_v2 = vpop.xlane.xlu0 %189 }
  0xc0   : > { %v192_v3 = vmul.f32 0.03125, %v190_v2 }
  0xc2   : > { %v193_v4 = vsub.f32 %v186_v0, %v192_v3 }
  0xc4   : > { %v194_v5 = vmul.f32 %v193_v4, %v193_v4 }
  0xc6   : > { %v195_v6 = vsel %vm187_vm0, %v194_v5, 0.0 }
  0xc7   : > { %196 = vadd.xlane.f32.xlu0 %v195_v6 }
 0x150   : > { %v197_v7 = vpop.xlane.xlu0 %196 }
 0x151   : > { %v199_v8 = vmul.f32 0.032258064, %v197_v7 }
 0x153   : > { %v200_v9 = vmax.f32 %v199_v8, 0.0 }
 0x155   : > { %373 = vrsqrt.f32 %v200_v9  ;;  %vm203_vm1 = vcmp.eq.f32.partialorder %v200_v9, inf  ;;  %v206_v12 = vand.u32 2147483648, %v200_v9  ;;  %vm205_vm2 = vcmp.eq.f32.partialorder %v200_v9, 0.0 }
 0x162   : > { %v374_v10 = vpop.eup %373 }
 0x163   : > { %v202_v11 = vmul.f32 %v374_v10, %v200_v9 }
 0x165   : > { %v204_v13 = vsel %vm203_vm1, %v200_v9, %v202_v11 }
 0x166   : > { %v207_v14 = vsel %vm205_vm2, %v206_v12, %v204_v13 }
 0x167   : > { %v208_v15 = vadd.f32 1e-06, %v207_v14 }
 0x169   : > { %375 = vrcp.f32 %v208_v15 }
 0x176   : > { %v376_v16 = vpop.eup %375 }
 0x177   : > { %v213_v18 = vmul.f32 %v376_v16, %v193_v4 }
 0x179   : > { %v220_v20 = vmul.f32 %v321_v17, %v213_v18 }
 0x17b   : > { %v227_v21 = vadd.f32 %v322_v19, %v220_v20 }
 0x17d   : > { %228 = vst.msk [vmem:[%s185_s10] sm:$0xff] %vm187_vm0, %v227_v21 }
 0x17e   : > { %418 = shalt.err (!%p415_p10)
}
 0x17f   : > { %s419_s30 = scalar_lea.hbm %s241_s20, 128  ;;  %s423_s7 = scalar_lea.hbm %s650_s3, 256 }
 0x180   : > { %p420_p2 = scmp.ne.s32.totalorder %s241_s20, %s419_s30  ;;  %p424_p7 = scmp.lt.s32.totalorder %s241_s20, %s650_s3 }
 0x181   : > { %p425_p0 = scmp.lt.s32.totalorder %s423_s7, %s419_s30 }
 0x182   : > { %p421_p4 = pnand %p420_p2, %p661_p12 }
 0x183   : > { %p426_p6 = por %p425_p0, %p424_p7 }
 0x184   : > { %p422_p9 = pneg %p421_p4 }
 0x186   : > { %p427_p11 = pnand %p426_p6, %p422_p9 }
 0x188   : > { %430 = shalt.err (!%p427_p11)
}
 0x189   : > { %329 = dma.vmem_to_hbm [thread:$0]  (%p661_p12), %s244_s11, 128, %s241_s20, %s230_s22  }
 0x18a PF: > { %s255_s6 = sand.u32 1, %s457_s12   ;;  %p662_p13 = scmp.ne.s32.totalorder %s656_s25, 0 }
 0x18b   : > { %p663_p1 = scmp.ge.s32.totalorder %s469_s15, 2  ;;  %s256_s8 = scalar_lea.sflag [#allocation4], %s255_s6 }
 0x18d   : > { %p336_p3 = pnand %p663_p1, %p662_p13 }
 0x18f   : > { %p337_p5 = pneg %p336_p3 }
 0x191   : > { %452 = dma.done.wait (%p337_p5), %s256_s8, 128  }
 0x192   : > { %454 = vsyncadd (%p337_p5), %s256_s8, 4294967168  ;;  %p16_p8 = scmp.ge.s32.totalorder %s518_s18, 4   ;;  %s664_s12 = smov %s461_s13 }
 0x193   : > { %s665_s13 = smov %s465_s14  ;;  %s666_s14 = smov %s530_s21 }
 0x194   : > { %s667_s15 = smov %s518_s18  ;;  %18 = sbr.rel (!%p16_p8) target bundleno = 5 (0x5), region = 77 }
 0x199   :  { %261 = vsyncpa [#allocation3], 1 }
 0x19a   :  { %263 = vsyncpa [#allocation3 + $0x1], 1 }
 0x19b   :  { %264 = vsyncpa [#allocation4], 1 }
 0x19c   :  { %266 = vsyncpa [#allocation4 + $0x1], 1 }

</bundles_post_ra>
